<compile_context>
chip_gen: v7x
topology: tpu7x:2x2x1
jax: 0.10.0
libtpu: 0.0.40
codegen_flags: <defaults>
</compile_context>

<pallas_src>
import jax
import jax.numpy as jnp
from jax.experimental import pallas as pl
from jax.experimental.pallas import tpu as pltpu


def _simple_rnn_kernel(x_ref, wih_ref, whh_ref, b_ref, wfc_ref, bfc_ref, o_ref):
    # x_ref:   (bm, T)   last `input_dim==1` channel already squeezed
    # wih_ref: (1, H)    == W_ih^T (input projection row)
    # whh_ref: (H, H)    == W_hh^T
    # b_ref:   (1, H)    == b_ih + b_hh
    # wfc_ref: (H, F)    == W_fc^T
    # bfc_ref: (1, F)
    # o_ref:   (bm, F)
    _, T = x_ref.shape

    wih = wih_ref[...]          # (1, H)
    whh_t = whh_ref[...]        # (H, H)
    b = b_ref[...]              # (1, H)

    # t = 0: h_0 == 0, so the recurrent matmul vanishes.
    h = jnp.tanh(x_ref[:, 0:1] * wih + b)                       # (bm, H)

    # Static unrolled recurrence over time (sequential dependence).
    for t in range(1, T):
        xt = x_ref[:, t:t + 1]                                  # (bm, 1) static slice
        pre = xt * wih + b + jnp.dot(h, whh_t,
                                     preferred_element_type=jnp.float32)
        h = jnp.tanh(pre)                                       # EUP tanh

    y = jnp.dot(h, wfc_ref[...],
                preferred_element_type=jnp.float32) + bfc_ref[...]
    o_ref[...] = y.astype(o_ref.dtype)


def simple_rnn_forward(x, w_ih, w_hh, b_ih, b_hh, w_fc, b_fc, *, block_b=None):
    """x: (B, T, 1) f32.
    w_ih: (H, 1), w_hh: (H, H), b_ih/b_hh: (H,), w_fc: (F, H), b_fc: (F,)."""
    B, T, D = x.shape
    assert D == 1, "kernel is specialized for input_dim == 1 (as in the module spec)"
    H = w_hh.shape[0]
    F = w_fc.shape[0]
    assert T >= 1

    if block_b is None:
        block_b = B if B <= 8 else 8 * min(max(B // 8, 1), 64)
    # Block must either equal the full batch or be a multiple of 8 and divide B.
    assert block_b == B or (block_b % 8 == 0 and B % block_b == 0), \
        "block_b must equal B or be a multiple of 8 dividing B"

    # Wrapper-side layout plumbing (no per-element compute of consequence):
    x2 = x[..., 0]                              # (B, T)  squeeze channel
    wih_row = w_ih.reshape(1, H)                # W_ih^T for input_dim == 1
    whh_t = w_hh.T                              # (H, H)
    b = (b_ih + b_hh).reshape(1, H)             # combined bias, one add per step saved
    wfc_t = w_fc.T                              # (H, F)
    bfc2 = b_fc.reshape(1, F)

    grid = (B // block_b,)

    return pl.pallas_call(
        _simple_rnn_kernel,
        out_shape=jax.ShapeDtypeStruct((B, F), jnp.float32),
        grid_spec=pltpu.PrefetchScalarGridSpec(
            num_scalar_prefetch=0,
            grid=grid,
            in_specs=[
                pl.BlockSpec((block_b, T), lambda i: (i, 0)),   # x tile over batch
                pl.BlockSpec((1, H), lambda i: (0, 0)),         # W_ih^T row
                pl.BlockSpec((H, H), lambda i: (0, 0)),         # W_hh^T
                pl.BlockSpec((1, H), lambda i: (0, 0)),         # b_ih + b_hh
                pl.BlockSpec((H, F), lambda i: (0, 0)),         # W_fc^T
                pl.BlockSpec((1, F), lambda i: (0, 0)),         # b_fc
            ],
            out_specs=pl.BlockSpec((block_b, F), lambda i: (i, 0)),
        ),
        compiler_params=pltpu.CompilerParams(
            dimension_semantics=("parallel",)),                 # batch rows independent
    )(x2, wih_row, whh_t, b, wfc_t, bfc2)


def _reference_forward(x, w_ih, w_hh, b_ih, b_hh, w_fc, b_fc):
    """Plain-JAX reference matching torch nn.RNN(batch_first=True) + Linear."""
    B, T, _ = x.shape
    H = w_hh.shape[0]
    h = jnp.zeros((B, H), jnp.float32)
    for t in range(T):
        h = jnp.tanh(x[:, t, :] @ w_ih.T + b_ih + h @ w_hh.T + b_hh)
    return h @ w_fc.T + b_fc


if __name__ == "__main__":
    input_dim = 1
    rnn_output_dim = 32   # hidden size
    future_steps = 1
    batch = 2
    seq = 8

    key = jax.random.PRNGKey(0)
    kx, k1, k2, k3, k4, k5, k6 = jax.random.split(key, 7)

    # PyTorch-style init: U(-1/sqrt(H), 1/sqrt(H)) for RNN and for the Linear head.
    bound = 1.0 / (rnn_output_dim ** 0.5)
    w_ih = jax.random.uniform(k1, (rnn_output_dim, input_dim), jnp.float32,
                              minval=-bound, maxval=bound)
    w_hh = jax.random.uniform(k2, (rnn_output_dim, rnn_output_dim), jnp.float32,
                              minval=-bound, maxval=bound)
    b_ih = jax.random.uniform(k3, (rnn_output_dim,), jnp.float32,
                              minval=-bound, maxval=bound)
    b_hh = jax.random.uniform(k4, (rnn_output_dim,), jnp.float32,
                              minval=-bound, maxval=bound)
    w_fc = jax.random.uniform(k5, (future_steps, rnn_output_dim), jnp.float32,
                              minval=-bound, maxval=bound)
    b_fc = jax.random.uniform(k6, (future_steps,), jnp.float32,
                              minval=-bound, maxval=bound)

    x = jax.random.normal(kx, (batch, seq, input_dim), jnp.float32)

    y = simple_rnn_forward(x, w_ih, w_hh, b_ih, b_hh, w_fc, b_fc)
    y = jax.block_until_ready(y)

    y_ref = _reference_forward(x, w_ih, w_hh, b_ih, b_hh, w_fc, b_fc)

    assert y.shape == (batch, future_steps)
    assert jnp.allclose(y, y_ref, atol=1e-5, rtol=1e-5), (y, y_ref)

    print("KERNEL_OK")
</pallas_src>

<mosaic_0001>
module attributes {stable_mosaic.version = 11 : i64} {
  func.func @_simple_rnn_kernel(%arg0: i32, %arg1: memref<2x8xf32, #tpu.memory_space<vmem>>, %arg2: memref<1x32xf32, #tpu.memory_space<vmem>>, %arg3: memref<32x32xf32, #tpu.memory_space<vmem>>, %arg4: memref<1x32xf32, #tpu.memory_space<vmem>>, %arg5: memref<32x1xf32, #tpu.memory_space<vmem>>, %arg6: memref<1x1xf32, #tpu.memory_space<vmem>>, %arg7: memref<2x1xf32, #tpu.memory_space<vmem>>) attributes {dimension_semantics = [#tpu.dimension_semantics<parallel>], iteration_bounds = array<i64: 1>, scalar_prefetch = 0 : i64, scratch_operands = 0 : i64, tpu.core_type = #tpu.core_type<tc>, window_params = [{transform_indices = @transform_0, window_bounds = array<i64: 2, 8>}, {pipeline_mode = #tpu.pipeline_mode<synchronous>, transform_indices = @transform_1, window_bounds = array<i64: 1, 32>}, {pipeline_mode = #tpu.pipeline_mode<synchronous>, transform_indices = @transform_2, window_bounds = array<i64: 32, 32>}, {pipeline_mode = #tpu.pipeline_mode<synchronous>, transform_indices = @transform_3, window_bounds = array<i64: 1, 32>}, {pipeline_mode = #tpu.pipeline_mode<synchronous>, transform_indices = @transform_4, window_bounds = array<i64: 32, 1>}, {pipeline_mode = #tpu.pipeline_mode<synchronous>, transform_indices = @transform_5, window_bounds = array<i64: 1, 1>}, {transform_indices = @transform_6, window_bounds = array<i64: 2, 1>}]} {
    %c0 = arith.constant 0 : index
    %c0_0 = arith.constant 0 : index
    %0 = vector.load %arg2[%c0, %c0_0] : memref<1x32xf32, #tpu.memory_space<vmem>>, vector<1x32xf32>
    %c0_1 = arith.constant 0 : index
    %c0_2 = arith.constant 0 : index
    %1 = vector.load %arg3[%c0_1, %c0_2] : memref<32x32xf32, #tpu.memory_space<vmem>>, vector<32x32xf32>
    %c0_3 = arith.constant 0 : index
    %c0_4 = arith.constant 0 : index
    %2 = vector.load %arg4[%c0_3, %c0_4] : memref<1x32xf32, #tpu.memory_space<vmem>>, vector<1x32xf32>
    %c0_5 = arith.constant 0 : index
    %c0_6 = arith.constant 0 : index
    %3 = vector.load %arg1[%c0_5, %c0_6] : memref<2x8xf32, #tpu.memory_space<vmem>>, vector<2x1xf32>
    %4 = vector.broadcast %3 : vector<2x1xf32> to vector<2x32xf32>
    %5 = vector.broadcast %0 : vector<1x32xf32> to vector<2x32xf32>
    %6 = arith.mulf %4, %5 : vector<2x32xf32>
    %7 = vector.broadcast %2 : vector<1x32xf32> to vector<2x32xf32>
    %8 = arith.addf %6, %7 : vector<2x32xf32>
    %9 = math.tanh %8 : vector<2x32xf32>
    %c0_7 = arith.constant 0 : index
    %c1 = arith.constant 1 : index
    %10 = vector.load %arg1[%c0_7, %c1] : memref<2x8xf32, #tpu.memory_space<vmem>>, vector<2x1xf32>
    %11 = vector.broadcast %10 : vector<2x1xf32> to vector<2x32xf32>
    %12 = vector.broadcast %0 : vector<1x32xf32> to vector<2x32xf32>
    %13 = arith.mulf %11, %12 : vector<2x32xf32>
    %14 = vector.broadcast %2 : vector<1x32xf32> to vector<2x32xf32>
    %15 = arith.addf %13, %14 : vector<2x32xf32>
    %cst = arith.constant dense<0.000000e+00> : vector<2x32xf32>
    %16 = tpu.matmul %9, %1, %cst {dimension_numbers = #tpu.dot_dimension_numbers<[1], [0], [0], [1], [0, 0, 1, 1], [], []>} : vector<2x32xf32>, vector<32x32xf32>, vector<2x32xf32> -> vector<2x32xf32>
    %17 = arith.addf %15, %16 : vector<2x32xf32>
    %18 = math.tanh %17 : vector<2x32xf32>
    %c0_8 = arith.constant 0 : index
    %c2 = arith.constant 2 : index
    %19 = vector.load %arg1[%c0_8, %c2] : memref<2x8xf32, #tpu.memory_space<vmem>>, vector<2x1xf32>
    %20 = vector.broadcast %19 : vector<2x1xf32> to vector<2x32xf32>
    %21 = vector.broadcast %0 : vector<1x32xf32> to vector<2x32xf32>
    %22 = arith.mulf %20, %21 : vector<2x32xf32>
    %23 = vector.broadcast %2 : vector<1x32xf32> to vector<2x32xf32>
    %24 = arith.addf %22, %23 : vector<2x32xf32>
    %cst_9 = arith.constant dense<0.000000e+00> : vector<2x32xf32>
    %25 = tpu.matmul %18, %1, %cst_9 {dimension_numbers = #tpu.dot_dimension_numbers<[1], [0], [0], [1], [0, 0, 1, 1], [], []>} : vector<2x32xf32>, vector<32x32xf32>, vector<2x32xf32> -> vector<2x32xf32>
    %26 = arith.addf %24, %25 : vector<2x32xf32>
    %27 = math.tanh %26 : vector<2x32xf32>
    %c0_10 = arith.constant 0 : index
    %c3 = arith.constant 3 : index
    %28 = vector.load %arg1[%c0_10, %c3] : memref<2x8xf32, #tpu.memory_space<vmem>>, vector<2x1xf32>
    %29 = vector.broadcast %28 : vector<2x1xf32> to vector<2x32xf32>
    %30 = vector.broadcast %0 : vector<1x32xf32> to vector<2x32xf32>
    %31 = arith.mulf %29, %30 : vector<2x32xf32>
    %32 = vector.broadcast %2 : vector<1x32xf32> to vector<2x32xf32>
    %33 = arith.addf %31, %32 : vector<2x32xf32>
    %cst_11 = arith.constant dense<0.000000e+00> : vector<2x32xf32>
    %34 = tpu.matmul %27, %1, %cst_11 {dimension_numbers = #tpu.dot_dimension_numbers<[1], [0], [0], [1], [0, 0, 1, 1], [], []>} : vector<2x32xf32>, vector<32x32xf32>, vector<2x32xf32> -> vector<2x32xf32>
    %35 = arith.addf %33, %34 : vector<2x32xf32>
    %36 = math.tanh %35 : vector<2x32xf32>
    %c0_12 = arith.constant 0 : index
    %c4 = arith.constant 4 : index
    %37 = vector.load %arg1[%c0_12, %c4] : memref<2x8xf32, #tpu.memory_space<vmem>>, vector<2x1xf32>
    %38 = vector.broadcast %37 : vector<2x1xf32> to vector<2x32xf32>
    %39 = vector.broadcast %0 : vector<1x32xf32> to vector<2x32xf32>
    %40 = arith.mulf %38, %39 : vector<2x32xf32>
    %41 = vector.broadcast %2 : vector<1x32xf32> to vector<2x32xf32>
    %42 = arith.addf %40, %41 : vector<2x32xf32>
    %cst_13 = arith.constant dense<0.000000e+00> : vector<2x32xf32>
    %43 = tpu.matmul %36, %1, %cst_13 {dimension_numbers = #tpu.dot_dimension_numbers<[1], [0], [0], [1], [0, 0, 1, 1], [], []>} : vector<2x32xf32>, vector<32x32xf32>, vector<2x32xf32> -> vector<2x32xf32>
    %44 = arith.addf %42, %43 : vector<2x32xf32>
    %45 = math.tanh %44 : vector<2x32xf32>
    %c0_14 = arith.constant 0 : index
    %c5 = arith.constant 5 : index
    %46 = vector.load %arg1[%c0_14, %c5] : memref<2x8xf32, #tpu.memory_space<vmem>>, vector<2x1xf32>
    %47 = vector.broadcast %46 : vector<2x1xf32> to vector<2x32xf32>
    %48 = vector.broadcast %0 : vector<1x32xf32> to vector<2x32xf32>
    %49 = arith.mulf %47, %48 : vector<2x32xf32>
    %50 = vector.broadcast %2 : vector<1x32xf32> to vector<2x32xf32>
    %51 = arith.addf %49, %50 : vector<2x32xf32>
    %cst_15 = arith.constant dense<0.000000e+00> : vector<2x32xf32>
    %52 = tpu.matmul %45, %1, %cst_15 {dimension_numbers = #tpu.dot_dimension_numbers<[1], [0], [0], [1], [0, 0, 1, 1], [], []>} : vector<2x32xf32>, vector<32x32xf32>, vector<2x32xf32> -> vector<2x32xf32>
    %53 = arith.addf %51, %52 : vector<2x32xf32>
    %54 = math.tanh %53 : vector<2x32xf32>
    %c0_16 = arith.constant 0 : index
    %c6 = arith.constant 6 : index
    %55 = vector.load %arg1[%c0_16, %c6] : memref<2x8xf32, #tpu.memory_space<vmem>>, vector<2x1xf32>
    %56 = vector.broadcast %55 : vector<2x1xf32> to vector<2x32xf32>
    %57 = vector.broadcast %0 : vector<1x32xf32> to vector<2x32xf32>
    %58 = arith.mulf %56, %57 : vector<2x32xf32>
    %59 = vector.broadcast %2 : vector<1x32xf32> to vector<2x32xf32>
    %60 = arith.addf %58, %59 : vector<2x32xf32>
    %cst_17 = arith.constant dense<0.000000e+00> : vector<2x32xf32>
    %61 = tpu.matmul %54, %1, %cst_17 {dimension_numbers = #tpu.dot_dimension_numbers<[1], [0], [0], [1], [0, 0, 1, 1], [], []>} : vector<2x32xf32>, vector<32x32xf32>, vector<2x32xf32> -> vector<2x32xf32>
    %62 = arith.addf %60, %61 : vector<2x32xf32>
    %63 = math.tanh %62 : vector<2x32xf32>
    %c0_18 = arith.constant 0 : index
    %c7 = arith.constant 7 : index
    %64 = vector.load %arg1[%c0_18, %c7] : memref<2x8xf32, #tpu.memory_space<vmem>>, vector<2x1xf32>
    %65 = vector.broadcast %64 : vector<2x1xf32> to vector<2x32xf32>
    %66 = vector.broadcast %0 : vector<1x32xf32> to vector<2x32xf32>
    %67 = arith.mulf %65, %66 : vector<2x32xf32>
    %68 = vector.broadcast %2 : vector<1x32xf32> to vector<2x32xf32>
    %69 = arith.addf %67, %68 : vector<2x32xf32>
    %cst_19 = arith.constant dense<0.000000e+00> : vector<2x32xf32>
    %70 = tpu.matmul %63, %1, %cst_19 {dimension_numbers = #tpu.dot_dimension_numbers<[1], [0], [0], [1], [0, 0, 1, 1], [], []>} : vector<2x32xf32>, vector<32x32xf32>, vector<2x32xf32> -> vector<2x32xf32>
    %71 = arith.addf %69, %70 : vector<2x32xf32>
    %72 = math.tanh %71 : vector<2x32xf32>
    %c0_20 = arith.constant 0 : index
    %c0_21 = arith.constant 0 : index
    %73 = vector.load %arg5[%c0_20, %c0_21] : memref<32x1xf32, #tpu.memory_space<vmem>>, vector<32x1xf32>
    %cst_22 = arith.constant dense<0.000000e+00> : vector<2x1xf32>
    %74 = tpu.matmul %72, %73, %cst_22 {dimension_numbers = #tpu.dot_dimension_numbers<[1], [0], [0], [1], [0, 0, 1, 1], [], []>} : vector<2x32xf32>, vector<32x1xf32>, vector<2x1xf32> -> vector<2x1xf32>
    %c0_23 = arith.constant 0 : index
    %c0_24 = arith.constant 0 : index
    %75 = vector.load %arg6[%c0_23, %c0_24] : memref<1x1xf32, #tpu.memory_space<vmem>>, vector<1x1xf32>
    %76 = vector.broadcast %75 : vector<1x1xf32> to vector<2x1xf32>
    %77 = arith.addf %74, %76 : vector<2x1xf32>
    %c0_25 = arith.constant 0 : index
    %c0_26 = arith.constant 0 : index
    %78 = vector.load %arg7[%c0_25, %c0_26] : memref<2x1xf32, #tpu.memory_space<vmem>>, vector<2x1xf32>
    tpu.vector_store %arg7[%c0_25, %c0_26], %77 {strides = array<i32>} : memref<2x1xf32, #tpu.memory_space<vmem>>, vector<2x1xf32>,
    return
  }
  func.func @transform_0(%arg0: i32) -> (i32, i32) {
    %c0_i32 = arith.constant 0 : i32
    %c0_i32_0 = arith.constant 0 : i32
    return %arg0, %c0_i32 : i32, i32
  }
  func.func @transform_1(%arg0: i32) -> (i32, i32) {
    %c0_i32 = arith.constant 0 : i32
    %c0_i32_0 = arith.constant 0 : i32
    %c0_i32_1 = arith.constant 0 : i32
    return %c0_i32, %c0_i32_0 : i32, i32
  }
  func.func @transform_2(%arg0: i32) -> (i32, i32) {
    %c0_i32 = arith.constant 0 : i32
    %c0_i32_0 = arith.constant 0 : i32
    %c0_i32_1 = arith.constant 0 : i32
    return %c0_i32, %c0_i32_0 : i32, i32
  }
  func.func @transform_3(%arg0: i32) -> (i32, i32) {
    %c0_i32 = arith.constant 0 : i32
    %c0_i32_0 = arith.constant 0 : i32
    %c0_i32_1 = arith.constant 0 : i32
    return %c0_i32, %c0_i32_0 : i32, i32
  }
  func.func @transform_4(%arg0: i32) -> (i32, i32) {
    %c0_i32 = arith.constant 0 : i32
    %c0_i32_0 = arith.constant 0 : i32
    %c0_i32_1 = arith.constant 0 : i32
    return %c0_i32, %c0_i32_0 : i32, i32
  }
  func.func @transform_5(%arg0: i32) -> (i32, i32) {
    %c0_i32 = arith.constant 0 : i32
    %c0_i32_0 = arith.constant 0 : i32
    %c0_i32_1 = arith.constant 0 : i32
    return %c0_i32, %c0_i32_0 : i32, i32
  }
  func.func @transform_6(%arg0: i32) -> (i32, i32) {
    %c0_i32 = arith.constant 0 : i32
    %c0_i32_0 = arith.constant 0 : i32
    return %arg0, %c0_i32 : i32, i32
  }
}

</mosaic_0001>

<bundles_post_ra>
// kernel: tpu_custom_call.1
= control target key start
LH: loop header
LB: loop body
LE: loop exit
PB: predicated region body
PF: predicated region fallthrough
CT: control target
= control target key end

     0   :  { %v933_v0 = vmov 0   ;;  %v934_v2 = vmov 0.0|0.0   ;;  %vm935_vm0 = vmmov 0   ;;  %v936_v6 = vmov 0.0   ;;  %s1106_s0 = inlined_call_operand.vmem [shape: f32[2,8], index: 0, kind: input, shape index: {}]   ;;  %s1107_s2 = inlined_call_operand.vmem [shape: f32[32,32], index: 2, kind: input, shape index: {}]   ;;  %s1108_s1 = inlined_call_operand.vmem [shape: f32[1,32], index: 1, kind: input, shape index: {}]   ;;  %s1109_s3 = inlined_call_operand.vmem [shape: f32[1,32], index: 3, kind: input, shape index: {}]   ;;  %s1110_s4 = inlined_call_operand.vmem [shape: f32[32,1], index: 4, kind: input, shape index: {}]   ;;  %s1111_s5 = inlined_call_operand.<no memory space> [shape: f32[1,1], index: 5, kind: input, shape index: {}]   ;;  %s1112_s6 = inlined_call_operand.vmem [shape: f32[2,1], index: 6, kind: output, shape index: {}]  }
   0x1   :  { %908 = vset.pattern.permute.xlu0 %v933_v0  ;;  %v982_v1 = vld [vmem:[%s1106_s0] sm:$0x3]  ;;  %849 = vmatprep.subr.bf16.mxu0 %v934_v2  ;;  %v27_v4 = vld [vmem:[%s1107_s2 + $0x8] sm:$0xff]  ;;  %v28_v5 = vld [vmem:[%s1107_s2 + $0x10] sm:$0xff]  ;;  %v937_v10 = vmov 1   ;;  %vm58_vm1 = vcmask 261120  }
   0x2   :  { %34 = vperm.xlu0 %908, %v982_v1   ;;  %v26_v3 = vld [vmem:[%s1107_s2] sm:$0xff]  ;;  %769 = vmatprep.mubr.msk.f32.mxu0 %vm935_vm0, %v936_v6  ;;  %v29_v8 = vld [vmem:[%s1107_s2 + $0x18] sm:$0xff]  ;;  %v938_v17 = vmov 2   ;;  %v939_v25 = vmov 3   ;;  %v940_v33 = vmov 4   ;;  %v941_v41 = vmov 5  }
   0x3   :  { %v997_v7 = vpack.c.bf16 %v27_v4, %v26_v3  ;;  %855 = vmatprep.subr.bf16.mxu1 %v934_v2  ;;  %780 = vmatprep.mubr.msk.f32.mxu1 %vm935_vm0, %v936_v6  ;;  %v1006_v9 = vpack.c.bf16 %v29_v8, %v28_v5  ;;  %v1019_v11 = vld [vmem:[%s1108_s1] ss:$0 sm:$0xff]  ;;  %v942_v49 = vmov 6   ;;  %v943_v57 = vmov 7   ;;  %v622_v4 = vld [vmem:[%s1110_s4 + $0x10] sm:$0xff] }
   0x4   :  { %v1024_v12 = vld [vmem:[%s1109_s3] ss:$0 sm:$0xff]  ;;  %910 = vset.pattern.permute.xlu1 %v938_v17  ;;  %v11_v8 = vstv %s1111_s5  ;;  %vm704_vm2 = vcmask 1024  }
   0x5   :  { %851 = vmatpush3.bf16.msra.mxu0 %v997_v7  ;;  %857 = vmatpush3.bf16.msra.mxu1 %v997_v7  ;;  %v620_v3 = vld [vmem:[%s1110_s4] sm:$0xff]  ;;  %12 = vst [vmem:[#allocation2] sm:$0x1] %v11_v8 }
   0x6   :  { %852 = vmatprep.subr.bf16.mxu0 %v934_v2  ;;  %858 = vmatprep.subr.bf16.mxu1 %v934_v2 }
   0x7   :  { %909 = vset.pattern.permute.xlu0 %v937_v10  ;;  %135 = vperm.xlu1 %910, %v982_v1  }
   0x8   :  { %53 = vperm.xlu0 %909, %v982_v1  }
   0x9   :  { %854 = vmatpush3.bf16.msra.mxu0 %v1006_v9  ;;  %860 = vmatpush3.bf16.msra.mxu1 %v1006_v9 }
   0xa   :  { %861 = vmatprep.subr.bf16.mxu0 %v934_v2  ;;  %867 = vmatprep.subr.bf16.mxu1 %v934_v2 }
   0xb   :  { %911 = vset.pattern.permute.xlu1 %v939_v25 }
   0xc   :  { %216 = vperm.xlu1 %911, %v982_v1   ;;  %913 = vset.pattern.permute.xlu0 %v941_v41 }
   0xd   :  { %378 = vperm.xlu0 %913, %v982_v1  }
  0x10   :  { %912 = vset.pattern.permute.xlu1 %v940_v33 }
  0x11   :  { %297 = vperm.xlu1 %912, %v982_v1   ;;  %916 = vset.pattern.permute.xlu0 %v943_v57 }
  0x15   :  { %914 = vset.pattern.permute.xlu1 %v942_v49 }
  0x16   :  { %459 = vperm.xlu1 %914, %v982_v1  }
  0x1a   :  { %915 = vset.pattern.permute.xlu1 %v943_v57 }
  0x1b   :  { %540 = vperm.xlu1 %915, %v982_v1   ;;  %v621_v1 = vld [vmem:[%s1110_s4 + $0x8] sm:$0xff] }
  0x1c   :  { %v892_v5 = vpack.c.bf16 %v621_v1, %v620_v3 }
  0x81   :  { %v35_v13 = vpop.permute.xlu0 %34 }
  0x82   :  { %v43_v14 = vmul.f32 %v1019_v11, %v35_v13 }
  0x84   :  { %v50_v15 = vadd.f32 %v1024_v12, %v43_v14 }
  0x86   :  { %917 = vtanh.f32 %v50_v15  ;;  %v136_v26 = vpop.permute.xlu1 %135 }
  0x87   :  { %v54_v18 = vpop.permute.xlu0 %53  ;;  %v138_v27 = vmul.f32 %v1019_v11, %v136_v26 }
  0x88   :  { %v56_v19 = vmul.f32 %v1019_v11, %v54_v18  ;;  %v719_v18 = vld [vmem:[#allocation2] ss:$0 sm:$0xff] }
  0x89   :  { %v139_v28 = vadd.f32 %v1024_v12, %v138_v27 }
  0x8a   :  { %v57_v20 = vadd.f32 %v1024_v12, %v56_v19 }
  0x8b   :  { %v217_v34 = vpop.permute.xlu1 %216 }
  0x8c   :  { %v219_v35 = vmul.f32 %v1019_v11, %v217_v34  ;;  %v379_v50 = vpop.permute.xlu0 %378 }
  0x8d   :  { %v381_v51 = vmul.f32 %v1019_v11, %v379_v50 }
  0x8e   :  { %v220_v36 = vadd.f32 %v1024_v12, %v219_v35 }
  0x8f   :  { %v382_v52 = vadd.f32 %v1024_v12, %v381_v51 }
  0x90   :  { %v918_v16 = vpop.eup %917  ;;  %v298_v42 = vpop.permute.xlu1 %297 }
  0x91   :  { %770 = vmatmul.mubr.msk.f32.vlgmr.msra.gmra.mrb[0].mxu0 %vm58_vm1, %v918_v16  ;;  %v300_v43 = vmul.f32 %v1019_v11, %v298_v42 }
  0x92   :  { %863 = vmatpush3.bf16.msra.mxu0 %v997_v7  ;;  %791 = vmatprep.mubr.msk.f32.mxu0 %vm935_vm0, %v936_v6 }
  0x93   :  { %864 = vmatprep.subr.bf16.mxu0 %v934_v2  ;;  %v301_v44 = vadd.f32 %v1024_v12, %v300_v43 }
  0x95   :  { %v460_v58 = vpop.permute.xlu1 %459 }
  0x96   :  { %866 = vmatpush3.bf16.msra.mxu0 %v1006_v9  ;;  %v462_v59 = vmul.f32 %v1019_v11, %v460_v58 }
  0x97   :  { %873 = vmatprep.subr.bf16.mxu0 %v934_v2 }
  0x98   :  { %v463_v60 = vadd.f32 %v1024_v12, %v462_v59 }
 0x164   :  { %v128_v21 = vpop.f32.mrb[0].mxu0 }
 0x165   :  { %v132_v22 = vadd.f32 %v128_v21, %v57_v20  ;;  %v771_v23 = vpop.f32.mrb[1].mxu0 }
 0x167   :  { %919 = vtanh.f32 %v132_v22 }
 0x171   :  { %v920_v24 = vpop.eup %919 }
 0x172   :  { %781 = vmatmul.mubr.msk.f32.vlgmr.msra.gmra.mrb[0].mxu1 %vm58_vm1, %v920_v24 }
 0x173   :  { %869 = vmatpush3.bf16.msra.mxu1 %v997_v7  ;;  %802 = vmatprep.mubr.msk.f32.mxu1 %vm935_vm0, %v936_v6 }
 0x174   :  { %870 = vmatprep.subr.bf16.mxu1 %v934_v2 }
 0x177   :  { %872 = vmatpush3.bf16.msra.mxu1 %v1006_v9 }
 0x178   :  { %879 = vmatprep.subr.bf16.mxu1 %v934_v2 }
 0x245   :  { %v209_v29 = vpop.f32.mrb[0].mxu1 }
 0x246   :  { %v213_v30 = vadd.f32 %v209_v29, %v139_v28  ;;  %v782_v31 = vpop.f32.mrb[1].mxu1 }
 0x248   :  { %921 = vtanh.f32 %v213_v30 }
 0x252   :  { %v922_v32 = vpop.eup %921 }
 0x253   :  { %792 = vmatmul.mubr.msk.f32.vlgmr.msra.gmra.mrb[2].mxu0 %vm58_vm1, %v922_v32 }
 0x254   :  { %875 = vmatpush3.bf16.msra.mxu0 %v997_v7  ;;  %813 = vmatprep.mubr.msk.f32.mxu0 %vm935_vm0, %v936_v6 }
 0x255   :  { %876 = vmatprep.subr.bf16.mxu0 %v934_v2 }
 0x258   :  { %878 = vmatpush3.bf16.msra.mxu0 %v1006_v9 }
 0x259   :  { %885 = vmatprep.subr.bf16.mxu0 %v934_v2 }
 0x326   :  { %v290_v37 = vpop.f32.mrb[2].mxu0 }
 0x327   :  { %v294_v38 = vadd.f32 %v290_v37, %v220_v36  ;;  %v793_v39 = vpop.f32.mrb[3].mxu0 }
 0x329   :  { %923 = vtanh.f32 %v294_v38 }
 0x333   :  { %v924_v40 = vpop.eup %923 }
 0x334   :  { %803 = vmatmul.mubr.msk.f32.vlgmr.msra.gmra.mrb[2].mxu1 %vm58_vm1, %v924_v40 }
 0x335   :  { %881 = vmatpush3.bf16.msra.mxu1 %v997_v7  ;;  %824 = vmatprep.mubr.msk.f32.mxu1 %vm935_vm0, %v936_v6 }
 0x336   :  { %882 = vmatprep.subr.bf16.mxu1 %v934_v2 }
 0x339   :  { %884 = vmatpush3.bf16.msra.mxu1 %v1006_v9 }
 0x33a   :  { %891 = vmatprep.subr.bf16.mxu1 %v934_v2 }
 0x407   :  { %v371_v45 = vpop.f32.mrb[2].mxu1 }
 0x408   :  { %v375_v46 = vadd.f32 %v371_v45, %v301_v44  ;;  %v804_v47 = vpop.f32.mrb[3].mxu1 }
 0x40a   :  { %925 = vtanh.f32 %v375_v46 }
 0x414   :  { %v926_v48 = vpop.eup %925 }
 0x415   :  { %814 = vmatmul.mubr.msk.f32.vlgmr.msra.gmra.mrb[4].mxu0 %vm58_vm1, %v926_v48 }
 0x416   :  { %887 = vmatpush3.bf16.msra.mxu0 %v997_v7  ;;  %835 = vmatprep.mubr.msk.f32.mxu0 %vm935_vm0, %v936_v6 }
 0x417   :  { %888 = vmatprep.subr.bf16.mxu0 %v934_v2 }
 0x41a   :  { %890 = vmatpush3.bf16.msra.mxu0 %v1006_v9  ;;  %v541_v9 = vpop.permute.xlu1 %540 }
 0x41b   :  { %v543_v10 = vmul.f32 %v1019_v11, %v541_v9 }
 0x41d   :  { %v544_v13 = vadd.f32 %v1024_v12, %v543_v10 }
 0x4e8   :  { %v452_v53 = vpop.f32.mrb[4].mxu0 }
 0x4e9   :  { %v456_v54 = vadd.f32 %v452_v53, %v382_v52  ;;  %v815_v55 = vpop.f32.mrb[5].mxu0 }
 0x4eb   :  { %927 = vtanh.f32 %v456_v54 }
 0x4f5   :  { %v928_v56 = vpop.eup %927 }
 0x4f6   :  { %825 = vmatmul.mubr.msk.f32.vlgmr.msra.gmra.mrb[4].mxu1 %vm58_vm1, %v928_v56 }
 0x4f7   :  { %846 = vmatprep.mubr.msk.f32.mxu1 %vm935_vm0, %v936_v6  ;;  %v623_v6 = vld [vmem:[%s1110_s4 + $0x18] sm:$0xff]  ;;  %893 = vmatpush3.bf16.msra.mxu1 %v892_v5 }
 0x4f8   :  { %v895_v7 = vpack.c.bf16 %v623_v6, %v622_v4  ;;  %894 = vmatprep.subr.bf16.mxu1 %v934_v2 }
 0x4fb   :  { %896 = vmatpush3.bf16.msra.mxu1 %v895_v7 }
 0x5c9   :  { %v533_v61 = vpop.f32.mrb[4].mxu1 }
 0x5ca   :  { %v537_v62 = vadd.f32 %v533_v61, %v463_v60  ;;  %v826_v63 = vpop.f32.mrb[5].mxu1 }
 0x5cc   :  { %929 = vtanh.f32 %v537_v62 }
 0x5d6   :  { %v930_v0 = vpop.eup %929 }
 0x5d7   :  { %836 = vmatmul.mubr.msk.f32.vlgmr.msra.gmra.mrb[6].mxu0 %vm58_vm1, %v930_v0 }
 0x6aa   :  { %v614_v14 = vpop.f32.mrb[6].mxu0 }
 0x6ab   :  { %v618_v15 = vadd.f32 %v614_v14, %v544_v13  ;;  %v837_v16 = vpop.f32.mrb[7].mxu0 }
 0x6ad   :  { %931 = vtanh.f32 %v618_v15 }
 0x6b7   :  { %v932_v17 = vpop.eup %931 }
 0x6b8   :  { %847 = vmatmul.mubr.msk.f32.vlgmr.msra.gmra.mrb[6].mxu1 %vm58_vm1, %v932_v17 }
 0x78b   :  { %v700_v2 = vpop.f32.mrb[6].mxu1 }
 0x78c   :  { %v701_v19 = vadd.f32 %v719_v18, %v700_v2  ;;  %v848_v20 = vpop.f32.mrb[7].mxu1 }
 0x78e   :  { %705 = vst.msk [vmem:[%s1112_s6] sm:$0x3] %vm704_vm2, %v701_v19 }

</bundles_post_ra>
